<compile_context>
chip_gen: v6e
topology: v6e:2x2x1
jax: 0.10.0
libtpu: 0.0.40
codegen_flags: <defaults>
</compile_context>

<pallas_src>
import functools

import jax
import jax.numpy as jnp
from jax.experimental import pallas as pl
from jax.experimental.pallas import tpu as pltpu

_EPS = 1e-6
_LANE = 128
_TARGET_BLOCK_BYTES = 4 * 1024 * 1024     # ~4 MiB per block
_VMEM_LIMIT_BYTES = 32 * 1024 * 1024      # safe on v5e/v6e/v7x


def _cdiv(a: int, b: int) -> int:
    return -(-a // b)


def _round_up(a: int, b: int) -> int:
    return _cdiv(a, b) * b


def _inverse_kernel(x_ref, o_ref, *, eps):
    x = x_ref[...]
    x = jnp.maximum(x, jnp.asarray(eps, dtype=x.dtype))
    o_ref[...] = (jnp.asarray(1.0, dtype=x.dtype) / x).astype(o_ref.dtype)


def _choose_cols(total: int):
    """Largest lane-dense width that divides the element count exactly."""
    for cols in (1024, 512, 256, 128):
        if total % cols == 0:
            return cols
    return None


@functools.partial(jax.jit, static_argnames=("eps",))
def inverse_forward(x: jax.Array, eps: float = _EPS) -> jax.Array:
    """Equivalent to PyTorch Inverse.forward: 1 / clamp(x, min=eps)."""
    # TODO(synk): torch.no_grad() around clamp_ only affects autograd; the
    # forward value is identical, which is all that is implemented here.
    orig_shape = x.shape
    orig_dtype = x.dtype
    itemsize = jnp.dtype(orig_dtype).itemsize
    sublane = max(8, 32 // itemsize)          # 8 (f32) / 16 (bf16) / 32 (i8)

    flat = x.reshape(-1)
    total = flat.shape[0]
    if total == 0:
        return x

    cols = _choose_cols(total)
    padded_total = total
    if cols is None:
        # TODO(synk): totals not divisible by 128 take a minimal pad+slice
        # path (extra HBM traffic); aligned shapes take the zero-copy path.
        cols = _LANE
        padded_total = _round_up(total, cols)
        flat = jnp.concatenate(
            [flat, jnp.ones((padded_total - total,), dtype=orig_dtype)]
        )

    rows = padded_total // cols
    x2d = flat.reshape(rows, cols)

    # ~4 MiB blocks, rounded down to the packed sublane size for this dtype.
    tile_r = max(
        sublane,
        (_TARGET_BLOCK_BYTES // (cols * itemsize)) // sublane * sublane,
    )
    # Keep >=2 grid steps on larger tensors so megacore sharding can kick in.
    if padded_total * itemsize > (1 << 20):
        tile_r = min(tile_r, _round_up(_cdiv(rows, 2), sublane))
    if tile_r >= rows:
        tile_r = rows          # single full-extent block (always legal)

    grid = (_cdiv(rows, tile_r),)   # ragged last block is masked by Pallas

    out = pl.pallas_call(
        functools.partial(_inverse_kernel, eps=eps),
        out_shape=jax.ShapeDtypeStruct((rows, cols), orig_dtype),
        grid_spec=pl.GridSpec(
            grid=grid,
            in_specs=[pl.BlockSpec((tile_r, cols), lambda i: (i, 0))],
            out_specs=pl.BlockSpec((tile_r, cols), lambda i: (i, 0)),
        ),
        compiler_params=pltpu.CompilerParams(
            dimension_semantics=("parallel",),
            vmem_limit_bytes=_VMEM_LIMIT_BYTES,
            allow_input_fusion=[True],
        ),
    )(x2d)

    if padded_total != total:
        return out.reshape(-1)[:total].reshape(orig_shape)
    return out.reshape(orig_shape)


class Inverse:
    """JAX/Pallas port of the PyTorch Inverse module."""

    def __init__(self) -> None:
        self.eps = _EPS

    def __call__(self, x):
        return inverse_forward(x, eps=self.eps)


if __name__ == "__main__":
    key = jax.random.PRNGKey(0)
    x = jax.random.normal(key, (2, 4, 16, 16), dtype=jnp.float32)

    module = Inverse()
    y = module(x)
    y = jax.block_until_ready(y)

    ref = 1.0 / jnp.maximum(x, _EPS)
    assert y.shape == x.shape
    assert y.dtype == x.dtype
    assert jnp.allclose(y, ref, rtol=1e-6, atol=0.0), (
        float(jnp.max(jnp.abs(y - ref)))
    )

    # Exercise the ragged (non-128-divisible) fallback path as well.
    x2 = jax.random.normal(jax.random.PRNGKey(1), (3, 5, 7), dtype=jnp.float32)
    y2 = jax.block_until_ready(module(x2))
    ref2 = 1.0 / jnp.maximum(x2, _EPS)
    assert y2.shape == x2.shape
    assert jnp.allclose(y2, ref2, rtol=1e-6, atol=0.0), (
        float(jnp.max(jnp.abs(y2 - ref2)))
    )

    print("KERNEL_OK")
</pallas_src>

<mosaic_0001>
module attributes {stable_mosaic.version = 11 : i64} {
  func.func @_inverse_kernel(%arg0: i32, %arg1: memref<2x1024xf32, #tpu.memory_space<vmem>>, %arg2: memref<2x1024xf32, #tpu.memory_space<vmem>>) attributes {dimension_semantics = [#tpu.dimension_semantics<parallel>], iteration_bounds = array<i64: 1>, scalar_prefetch = 0 : i64, scratch_operands = 0 : i64, tpu.core_type = #tpu.core_type<tc>, window_params = [{transform_indices = @transform_0, window_bounds = array<i64: 2, 1024>}, {transform_indices = @transform_1, window_bounds = array<i64: 2, 1024>}]} {
    %c0 = arith.constant 0 : index
    %c0_0 = arith.constant 0 : index
    %0 = vector.load %arg1[%c0, %c0_0] : memref<2x1024xf32, #tpu.memory_space<vmem>>, vector<2x1024xf32>
    %cst = arith.constant 9.99999997E-7 : f32
    %1 = vector.broadcast %cst : f32 to vector<2x1024xf32>
    %2 = arith.maximumf %0, %1 : vector<2x1024xf32>
    %cst_1 = arith.constant 1.000000e+00 : f32
    %3 = vector.broadcast %cst_1 : f32 to vector<2x1024xf32>
    %4 = arith.divf %3, %2 : vector<2x1024xf32>
    %c0_2 = arith.constant 0 : index
    %c0_3 = arith.constant 0 : index
    %5 = vector.load %arg2[%c0_2, %c0_3] : memref<2x1024xf32, #tpu.memory_space<vmem>>, vector<2x1024xf32>
    tpu.vector_store %arg2[%c0_2, %c0_3], %4 {strides = array<i32>} : memref<2x1024xf32, #tpu.memory_space<vmem>>, vector<2x1024xf32>,
    return
  }
  func.func @transform_0(%arg0: i32) -> (i32, i32) {
    %c0_i32 = arith.constant 0 : i32
    %c0_i32_0 = arith.constant 0 : i32
    return %arg0, %c0_i32 : i32, i32
  }
  func.func @transform_1(%arg0: i32) -> (i32, i32) {
    %c0_i32 = arith.constant 0 : i32
    %c0_i32_0 = arith.constant 0 : i32
    return %arg0, %c0_i32 : i32, i32
  }
}

</mosaic_0001>

<bundles_post_ra>
// kernel: inverse_forward.1
= control target key start
LH: loop header
LB: loop body
LE: loop exit
PB: predicated region body
PF: predicated region fallthrough
CT: control target
= control target key end

     0   :  { %s48_s0 = inlined_call_operand.vmem [shape: f32[2,1024], index: 0, kind: input, shape index: {}]   ;;  %s49_s1 = inlined_call_operand.vmem [shape: f32[2,1024], index: 1, kind: output, shape index: {}]  }
   0x1   :  { %v8_v0 = vld [vmem:[%s48_s0] sm:$0xff]  ;;  %v9_v1 = vld [vmem:[%s48_s0 + $0x8] sm:$0xff] }
   0x2   :  { %v10_v2 = vmax.f32 %v8_v0, 1e-06  ;;  %v11_v3 = vmax.f32 %v9_v1, 1e-06 }
   0x4   :  { %22 = vrcp.f32 %v10_v2 }
   0x5   :  { %24 = vrcp.f32 %v11_v3 }
  0x11   :  { %v23_v4 = vpop.eup %22 }
  0x12   :  { %v25_v5 = vpop.eup %24  ;;  %16 = vst [vmem:[%s49_s1] sm:$0xff] %v23_v4 }
  0x13   :  { %17 = vst [vmem:[%s49_s1 + $0x8] sm:$0xff] %v25_v5 }

</bundles_post_ra>
